<compile_context>
chip_gen: v5e
topology: v5e:2x2
jax: 0.10.0
libtpu: 0.0.40
codegen_flags: <defaults>
</compile_context>

<pallas_src>
import functools

import jax
import jax.numpy as jnp
from jax.experimental import pallas as pl
from jax.experimental.pallas import tpu as pltpu

NUM_CLASSES = 5
ALPHA = 0.2
GAMMA = 2.0


# ---------------------------------------------------------------------------
# Pallas kernel: focal + varifocal classification losses (lane-dense layout)
# ---------------------------------------------------------------------------
def _label_loss_kernel(logits_ref, tc_ref, ts_ref,
                       focal_out, vfl_out,
                       facc, vacc, *, alpha, gamma):
    step = pl.program_id(0)

    @pl.when(step == 0)
    def _():
        facc[...] = jnp.zeros_like(facc)
        vacc[...] = jnp.zeros_like(vacc)

    x = logits_ref[...].astype(jnp.float32)     # (bb, C, Q)  lane-dense (Q on lanes)
    tc = tc_ref[...]                            # (bb, 1, Q)  int32 class id (C == background)
    tso = ts_ref[...].astype(jnp.float32)       # (bb, 1, Q)  matched IoU (0 elsewhere)

    bb, C, Q = x.shape

    # one-hot target built in-kernel (background class C -> all-zero row).
    cls = jax.lax.broadcasted_iota(jnp.int32, (bb, C, Q), 1)
    t = (cls == tc).astype(jnp.float32)         # (bb, C, Q)
    ts = tso * t                                # iou-weighted target score

    # ---- shared transcendental pieces (single exp / log1p / reciprocal) ----
    e = jnp.exp(-jnp.abs(x))                    # EUP exp, reused below
    sp = jnp.log1p(e)                           # softplus(-|x|)
    mx = jnp.maximum(x, 0.0)
    inv = pl.reciprocal(1.0 + e, approx=True)   # EUP vrcp (cheap slot)
    p = jnp.where(x >= 0.0, inv, e * inv)       # sigmoid(x) from shared exp

    # BCE-with-logits(x, y) = max(x,0) - x*y + log1p(exp(-|x|))
    ce_t = mx - x * t + sp                      # targets = one-hot
    ce_ts = mx - x * ts + sp                    # targets = iou-weighted score

    # ---- sigmoid focal loss ----
    one_minus_pt = jnp.maximum(1.0 - (p * t + (1.0 - p) * (1.0 - t)), 0.0)
    if gamma == 2.0:                            # avoid pow -> exp(log) on EUP
        mod = one_minus_pt * one_minus_pt
        p_pow = p * p
    else:
        mod = one_minus_pt ** gamma
        p_pow = p ** gamma
    alpha_t = alpha * t + (1.0 - alpha) * (1.0 - t)
    focal = alpha_t * ce_t * mod

    # ---- varifocal loss ----
    w = alpha * p_pow * (1.0 - t) + ts
    vfl = w * ce_ts

    # per-step accumulation: pure VPU adds (no per-step cross-lane reduce)
    facc[...] += jnp.sum(focal, axis=0)         # (C, Q)
    vacc[...] += jnp.sum(vfl, axis=0)

    # single final reduction + scalar SMEM store
    @pl.when(step == pl.num_programs(0) - 1)
    def _():
        focal_out[0, 0] = jnp.sum(facc[...])
        vfl_out[0, 0] = jnp.sum(vacc[...])


def _pick_block_batch(B, C, Q, budget_bytes=4 << 20):
    """Largest divisor of B whose block (logits + class ids + scores) fits budget."""
    per_b = (C + 2) * Q * 4
    bb = max(1, min(B, budget_bytes // max(per_b, 1)))
    while B % bb != 0:
        bb -= 1
    return bb


def label_losses(pred_logits, target_classes, target_score_o,
                 alpha=ALPHA, gamma=GAMMA):
    """Sum of focal and varifocal losses over all (batch, query, class) elems.

    pred_logits     : [B, Q, C] f32
    target_classes  : [B, Q]    int32 in [0, C]  (C == background / no-object)
    target_score_o  : [B, Q]    f32 matched IoU (0 for background)
    """
    B, Q, C = pred_logits.shape

    # lane-dense layout: Q (large) on the 128-lane axis, C (small) on sublanes.
    logits_t = jnp.swapaxes(pred_logits, 1, 2)            # [B, C, Q]
    tc3 = target_classes.astype(jnp.int32)[:, None, :]    # [B, 1, Q]
    ts3 = target_score_o.astype(jnp.float32)[:, None, :]  # [B, 1, Q]

    bb = _pick_block_batch(B, C, Q)
    grid = (B // bb,)

    kernel = functools.partial(_label_loss_kernel, alpha=alpha, gamma=gamma)
    # TODO(synk): on v7x, per-block partial-sum VMEM outputs + "parallel"
    # semantics would let both TensorCores share the grid; kept "arbitrary"
    # here because of the shared VMEM accumulator.
    focal_sum, vfl_sum = pl.pallas_call(
        kernel,
        grid=grid,
        in_specs=[
            pl.BlockSpec((bb, C, Q), lambda i: (i, 0, 0)),
            pl.BlockSpec((bb, 1, Q), lambda i: (i, 0, 0)),
            pl.BlockSpec((bb, 1, Q), lambda i: (i, 0, 0)),
        ],
        out_specs=(
            pl.BlockSpec(memory_space=pltpu.MemorySpace.SMEM),
            pl.BlockSpec(memory_space=pltpu.MemorySpace.SMEM),
        ),
        out_shape=(
            jax.ShapeDtypeStruct((1, 1), jnp.float32),
            jax.ShapeDtypeStruct((1, 1), jnp.float32),
        ),
        scratch_shapes=[
            pltpu.VMEM((C, Q), jnp.float32),
            pltpu.VMEM((C, Q), jnp.float32),
        ],
        compiler_params=pltpu.CompilerParams(
            dimension_semantics=("arbitrary",)),
    )(logits_t, tc3, ts3)
    return focal_sum[0, 0], vfl_sum[0, 0]


# ---------------------------------------------------------------------------
# Box losses: tiny (4*B*Tmax floats) -> fused XLA elementwise, eps-guarded.
# ---------------------------------------------------------------------------
def _box_losses_jax(src, tgt, valid, eps=1e-7):
    """src, tgt: [B, T, 4] cxcywh in [0,1]; valid: [B, T] bool.

    Returns (iou, l1, giou_loss), each [B, T], already masked by `valid`.
    """
    def to_xyxy(b):
        cx, cy, w, h = b[..., 0], b[..., 1], b[..., 2], b[..., 3]
        return cx - 0.5 * w, cy - 0.5 * h, cx + 0.5 * w, cy + 0.5 * h

    sx1, sy1, sx2, sy2 = to_xyxy(src)
    tx1, ty1, tx2, ty2 = to_xyxy(tgt)

    area_s = (sx2 - sx1) * (sy2 - sy1)
    area_t = (tx2 - tx1) * (ty2 - ty1)

    iw = jnp.maximum(jnp.minimum(sx2, tx2) - jnp.maximum(sx1, tx1), 0.0)
    ih = jnp.maximum(jnp.minimum(sy2, ty2) - jnp.maximum(sy1, ty1), 0.0)
    inter = iw * ih
    union = area_s + area_t - inter
    iou = inter / (union + eps)                 # eps: degenerate padded boxes

    cw = jnp.maximum(jnp.maximum(sx2, tx2) - jnp.minimum(sx1, tx1), 0.0)
    ch = jnp.maximum(jnp.maximum(sy2, ty2) - jnp.minimum(sy1, ty1), 0.0)
    area_c = cw * ch
    giou = iou - (area_c - union) / (area_c + eps)

    m = valid.astype(jnp.float32)
    l1 = jnp.sum(jnp.abs(src - tgt), axis=-1) * m
    return iou * m, l1, (1.0 - giou) * m


# ---------------------------------------------------------------------------
# Criterion forward (main-branch semantics of RTDETRCriterionv2.forward)
# ---------------------------------------------------------------------------
def rtdetr_criterion_forward(pred_logits, pred_boxes, tgt_labels, tgt_boxes,
                             tgt_valid, weight_dict,
                             num_classes=NUM_CLASSES, alpha=ALPHA, gamma=GAMMA):
    B, Q, C = pred_logits.shape
    _, Tmax = tgt_labels.shape

    # num_boxes = clamp(total ground-truth count, min=1)
    # TODO(synk): torch.distributed all_reduce / world-size division omitted
    # (single device).
    num_boxes = jnp.maximum(jnp.sum(tgt_valid.astype(jnp.float32)), 1.0)

    # TODO(synk): Hungarian matcher (self.matcher) is an external module;
    # deterministic identity matching (src_idx == tgt_idx == arange) is used.
    src_idx = jnp.broadcast_to(jnp.arange(Tmax, dtype=jnp.int32)[None, :], (B, Tmax))
    tgt_idx = src_idx
    batch_ar = jnp.arange(B, dtype=jnp.int32)[:, None]

    # gather matched target labels/boxes and matched predicted boxes
    lab_m = jnp.take_along_axis(tgt_labels, tgt_idx, axis=1)                # [B,Tmax]
    box_m = jnp.take_along_axis(tgt_boxes, tgt_idx[..., None], axis=1)      # [B,Tmax,4]
    src_box_m = jnp.take_along_axis(pred_boxes, src_idx[..., None], axis=1) # [B,Tmax,4]

    # ---- box losses + per-pair IoU for the VFL target score (fused XLA) ----
    iou, l1, giou_l = _box_losses_jax(src_box_m, box_m, tgt_valid)
    loss_bbox = jnp.sum(l1) / num_boxes
    loss_giou = jnp.sum(giou_l) / num_boxes
    iou_detached = jax.lax.stop_gradient(iou)

    # ---- compact [B, Q] classification targets (no dense [B,Q,C] tensors) ----
    scatter_q = jnp.where(tgt_valid, src_idx, Q)     # OOB index -> dropped
    target_classes = jnp.full((B, Q), num_classes, dtype=jnp.int32)
    target_classes = target_classes.at[batch_ar, scatter_q].set(lab_m, mode='drop')
    target_score_o = jnp.zeros((B, Q), dtype=jnp.float32)
    target_score_o = target_score_o.at[batch_ar, scatter_q].set(iou_detached,
                                                                mode='drop')

    # ---- classification losses (Pallas hot path) ----
    focal_sum, vfl_sum = label_losses(pred_logits, target_classes,
                                      target_score_o, alpha, gamma)
    # loss.mean(1).sum() * Q / num_boxes  ==  total_sum / num_boxes
    loss_focal = focal_sum / num_boxes
    loss_vfl = vfl_sum / num_boxes

    # TODO(synk): aux_outputs / dn_aux_outputs / enc_aux_outputs branches reuse
    # the same per-level losses; only the main outputs branch is built here.
    losses = {
        'loss_focal': loss_focal * weight_dict['loss_focal'],
        'loss_vfl': loss_vfl * weight_dict['loss_vfl'],
        'loss_bbox': loss_bbox * weight_dict['loss_bbox'],
        'loss_giou': loss_giou * weight_dict['loss_giou'],
    }
    return losses


if __name__ == "__main__":
    key = jax.random.PRNGKey(0)
    B, Q, C, Tmax = 2, 32, NUM_CLASSES, 4
    k1, k2, k3, k4 = jax.random.split(key, 4)

    pred_logits = jax.random.normal(k1, (B, Q, C), dtype=jnp.float32)
    pred_boxes = jax.random.uniform(k2, (B, Q, 4), minval=0.1, maxval=0.9,
                                    dtype=jnp.float32)
    tgt_labels = jax.random.randint(k3, (B, Tmax), 0, C).astype(jnp.int32)
    tgt_boxes = jax.random.uniform(k4, (B, Tmax, 4), minval=0.2, maxval=0.8,
                                   dtype=jnp.float32)
    num_gt = jnp.array([3, 2], dtype=jnp.int32)           # 3 + 2 = 5 GT boxes
    tgt_valid = jnp.arange(Tmax)[None, :] < num_gt[:, None]
    # padded slots: zero (degenerate) boxes, must not produce NaN
    tgt_boxes = tgt_boxes * tgt_valid[..., None].astype(jnp.float32)

    weight_dict = {'loss_focal': 1.0, 'loss_vfl': 1.0,
                   'loss_bbox': 5.0, 'loss_giou': 2.0}

    losses = rtdetr_criterion_forward(pred_logits, pred_boxes, tgt_labels,
                                      tgt_boxes, tgt_valid, weight_dict)
    losses = jax.block_until_ready(losses)

    for name, val in losses.items():
        assert bool(jnp.isfinite(val)), f"non-finite loss: {name}"

    print("KERNEL_OK")
</pallas_src>

<mosaic_0001>
module attributes {stable_mosaic.version = 11 : i64} {
  func.func @_label_loss_kernel(%arg0: i32, %arg1: memref<2x5x32xf32, #tpu.memory_space<vmem>>, %arg2: memref<2x1x32xi32, #tpu.memory_space<vmem>>, %arg3: memref<2x1x32xf32, #tpu.memory_space<vmem>>, %arg4: memref<1x1xf32, #tpu.memory_space<smem>>, %arg5: memref<1x1xf32, #tpu.memory_space<smem>>, %arg6: memref<5x32xf32, #tpu.memory_space<vmem>>, %arg7: memref<5x32xf32, #tpu.memory_space<vmem>>) attributes {dimension_semantics = [#tpu.dimension_semantics<arbitrary>], iteration_bounds = array<i64: 1>, scalar_prefetch = 0 : i64, scratch_operands = 2 : i64, tpu.core_type = #tpu.core_type<tc>, window_params = [{transform_indices = @transform_0, window_bounds = array<i64: 2, 5, 32>}, {transform_indices = @transform_1, window_bounds = array<i64: 2, 1, 32>}, {transform_indices = @transform_2, window_bounds = array<i64: 2, 1, 32>}, {transform_indices = @transform_3, window_bounds = array<i64: 1, 1>}, {transform_indices = @transform_4, window_bounds = array<i64: 1, 1>}]} {
    %c0_i32 = arith.constant 0 : i32
    %0 = arith.cmpi eq, %arg0, %c0_i32 : i32
    %1 = arith.extui %0 : i1 to i32
    %c0_i32_0 = arith.constant 0 : i32
    %2 = arith.cmpi ne, %1, %c0_i32_0 : i32
    scf.if %2 {
      %cst_33 = arith.constant 0.000000e+00 : f32
      %73 = vector.broadcast %cst_33 : f32 to vector<5x32xf32>
      %c0_34 = arith.constant 0 : index
      %c0_35 = arith.constant 0 : index
      %74 = vector.load %arg6[%c0_34, %c0_35] : memref<5x32xf32, #tpu.memory_space<vmem>>, vector<5x32xf32>
      tpu.vector_store %arg6[%c0_34, %c0_35], %73 {strides = array<i32>} : memref<5x32xf32, #tpu.memory_space<vmem>>, vector<5x32xf32>,
      %cst_36 = arith.constant 0.000000e+00 : f32
      %75 = vector.broadcast %cst_36 : f32 to vector<5x32xf32>
      %c0_37 = arith.constant 0 : index
      %c0_38 = arith.constant 0 : index
      %76 = vector.load %arg7[%c0_37, %c0_38] : memref<5x32xf32, #tpu.memory_space<vmem>>, vector<5x32xf32>
      tpu.vector_store %arg7[%c0_37, %c0_38], %75 {strides = array<i32>} : memref<5x32xf32, #tpu.memory_space<vmem>>, vector<5x32xf32>,
    } else {
    }
    %c0 = arith.constant 0 : index
    %c0_1 = arith.constant 0 : index
    %c0_2 = arith.constant 0 : index
    %3 = vector.load %arg1[%c0, %c0_1, %c0_2] : memref<2x5x32xf32, #tpu.memory_space<vmem>>, vector<2x5x32xf32>
    %c0_3 = arith.constant 0 : index
    %c0_4 = arith.constant 0 : index
    %c0_5 = arith.constant 0 : index
    %4 = vector.load %arg2[%c0_3, %c0_4, %c0_5] : memref<2x1x32xi32, #tpu.memory_space<vmem>>, vector<2x1x32xi32>
    %c0_6 = arith.constant 0 : index
    %c0_7 = arith.constant 0 : index
    %c0_8 = arith.constant 0 : index
    %5 = vector.load %arg3[%c0_6, %c0_7, %c0_8] : memref<2x1x32xf32, #tpu.memory_space<vmem>>, vector<2x1x32xf32>
    %6 = tpu.iota {dimensions = array<i32: 1>} : vector<2x5x32xi32>
    %7 = vector.broadcast %4 : vector<2x1x32xi32> to vector<2x5x32xi32>
    %8 = arith.cmpi eq, %6, %7 : vector<2x5x32xi32>
    %9 = arith.extui %8 : vector<2x5x32xi1> to vector<2x5x32xi32>
    %10 = arith.sitofp %9 : vector<2x5x32xi32> to vector<2x5x32xf32>
    %11 = vector.broadcast %5 : vector<2x1x32xf32> to vector<2x5x32xf32>
    %12 = arith.mulf %11, %10 : vector<2x5x32xf32>
    %13 = math.absf %3 : vector<2x5x32xf32>
    %cst = arith.constant 0.000000e+00 : f32
    %14 = vector.broadcast %cst : f32 to vector<2x5x32xf32>
    %15 = arith.subf %14, %13 : vector<2x5x32xf32>
    %16 = math.exp %15 : vector<2x5x32xf32>
    %17 = math.log1p %16 : vector<2x5x32xf32>
    %cst_9 = arith.constant 0.000000e+00 : f32
    %18 = vector.broadcast %cst_9 : f32 to vector<2x5x32xf32>
    %19 = arith.maximumf %3, %18 : vector<2x5x32xf32>
    %cst_10 = arith.constant 1.000000e+00 : f32
    %20 = vector.broadcast %cst_10 : f32 to vector<2x5x32xf32>
    %21 = arith.addf %20, %16 : vector<2x5x32xf32>
    %22 = tpu.reciprocal %21 {approx = true} : vector<2x5x32xf32> -> vector<2x5x32xf32>
    %cst_11 = arith.constant 0.000000e+00 : f32
    %23 = vector.broadcast %cst_11 : f32 to vector<2x5x32xf32>
    %24 = arith.cmpf oge, %3, %23 : vector<2x5x32xf32>
    %25 = arith.mulf %16, %22 : vector<2x5x32xf32>
    %26 = arith.select %24, %22, %25 : vector<2x5x32xi1>, vector<2x5x32xf32>
    %27 = arith.mulf %3, %10 : vector<2x5x32xf32>
    %28 = arith.subf %19, %27 : vector<2x5x32xf32>
    %29 = arith.addf %28, %17 : vector<2x5x32xf32>
    %30 = arith.mulf %3, %12 : vector<2x5x32xf32>
    %31 = arith.subf %19, %30 : vector<2x5x32xf32>
    %32 = arith.addf %31, %17 : vector<2x5x32xf32>
    %33 = arith.mulf %26, %10 : vector<2x5x32xf32>
    %cst_12 = arith.constant 1.000000e+00 : f32
    %34 = vector.broadcast %cst_12 : f32 to vector<2x5x32xf32>
    %35 = arith.subf %34, %26 : vector<2x5x32xf32>
    %cst_13 = arith.constant 1.000000e+00 : f32
    %36 = vector.broadcast %cst_13 : f32 to vector<2x5x32xf32>
    %37 = arith.subf %36, %10 : vector<2x5x32xf32>
    %38 = arith.mulf %35, %37 : vector<2x5x32xf32>
    %39 = arith.addf %33, %38 : vector<2x5x32xf32>
    %cst_14 = arith.constant 1.000000e+00 : f32
    %40 = vector.broadcast %cst_14 : f32 to vector<2x5x32xf32>
    %41 = arith.subf %40, %39 : vector<2x5x32xf32>
    %cst_15 = arith.constant 0.000000e+00 : f32
    %42 = vector.broadcast %cst_15 : f32 to vector<2x5x32xf32>
    %43 = arith.maximumf %41, %42 : vector<2x5x32xf32>
    %44 = arith.mulf %43, %43 : vector<2x5x32xf32>
    %45 = arith.mulf %26, %26 : vector<2x5x32xf32>
    %cst_16 = arith.constant 2.000000e-01 : f32
    %46 = vector.broadcast %cst_16 : f32 to vector<2x5x32xf32>
    %47 = arith.mulf %46, %10 : vector<2x5x32xf32>
    %cst_17 = arith.constant 1.000000e+00 : f32
    %48 = vector.broadcast %cst_17 : f32 to vector<2x5x32xf32>
    %49 = arith.subf %48, %10 : vector<2x5x32xf32>
    %cst_18 = arith.constant 8.000000e-01 : f32
    %50 = vector.broadcast %cst_18 : f32 to vector<2x5x32xf32>
    %51 = arith.mulf %50, %49 : vector<2x5x32xf32>
    %52 = arith.addf %47, %51 : vector<2x5x32xf32>
    %53 = arith.mulf %52, %29 : vector<2x5x32xf32>
    %54 = arith.mulf %53, %44 : vector<2x5x32xf32>
    %cst_19 = arith.constant 2.000000e-01 : f32
    %55 = vector.broadcast %cst_19 : f32 to vector<2x5x32xf32>
    %56 = arith.mulf %55, %45 : vector<2x5x32xf32>
    %cst_20 = arith.constant 1.000000e+00 : f32
    %57 = vector.broadcast %cst_20 : f32 to vector<2x5x32xf32>
    %58 = arith.subf %57, %10 : vector<2x5x32xf32>
    %59 = arith.mulf %56, %58 : vector<2x5x32xf32>
    %60 = arith.addf %59, %12 : vector<2x5x32xf32>
    %61 = arith.mulf %60, %32 : vector<2x5x32xf32>
    %c0_21 = arith.constant 0 : index
    %c0_22 = arith.constant 0 : index
    %62 = vector.load %arg6[%c0_21, %c0_22] : memref<5x32xf32, #tpu.memory_space<vmem>>, vector<5x32xf32>
    %cst_23 = arith.constant dense<0.000000e+00> : vector<5x32xf32>
    %63 = vector.multi_reduction <add>, %54, %cst_23 [0] : vector<2x5x32xf32> to vector<5x32xf32>
    %64 = arith.addf %62, %63 : vector<5x32xf32>
    %c0_24 = arith.constant 0 : index
    %c0_25 = arith.constant 0 : index
    %65 = vector.load %arg6[%c0_24, %c0_25] : memref<5x32xf32, #tpu.memory_space<vmem>>, vector<5x32xf32>
    tpu.vector_store %arg6[%c0_24, %c0_25], %64 {strides = array<i32>} : memref<5x32xf32, #tpu.memory_space<vmem>>, vector<5x32xf32>,
    %c0_26 = arith.constant 0 : index
    %c0_27 = arith.constant 0 : index
    %66 = vector.load %arg7[%c0_26, %c0_27] : memref<5x32xf32, #tpu.memory_space<vmem>>, vector<5x32xf32>
    %cst_28 = arith.constant dense<0.000000e+00> : vector<5x32xf32>
    %67 = vector.multi_reduction <add>, %61, %cst_28 [0] : vector<2x5x32xf32> to vector<5x32xf32>
    %68 = arith.addf %66, %67 : vector<5x32xf32>
    %c0_29 = arith.constant 0 : index
    %c0_30 = arith.constant 0 : index
    %69 = vector.load %arg7[%c0_29, %c0_30] : memref<5x32xf32, #tpu.memory_space<vmem>>, vector<5x32xf32>
    tpu.vector_store %arg7[%c0_29, %c0_30], %68 {strides = array<i32>} : memref<5x32xf32, #tpu.memory_space<vmem>>, vector<5x32xf32>,
    %c0_i32_31 = arith.constant 0 : i32
    %70 = arith.cmpi eq, %arg0, %c0_i32_31 : i32
    %71 = arith.extui %70 : i1 to i32
    %c0_i32_32 = arith.constant 0 : i32
    %72 = arith.cmpi ne, %71, %c0_i32_32 : i32
    scf.if %72 {
      %c0_33 = arith.constant 0 : index
      %c0_34 = arith.constant 0 : index
      %73 = vector.load %arg6[%c0_33, %c0_34] : memref<5x32xf32, #tpu.memory_space<vmem>>, vector<5x32xf32>
      %74 = vector.shape_cast %73 : vector<5x32xf32> to vector<1x5x32xf32>
      %cst_35 = arith.constant dense<0.000000e+00> : vector<1xf32>
      %75 = vector.multi_reduction <add>, %74, %cst_35 [1, 2] : vector<1x5x32xf32> to vector<1xf32>
      %76 = vector.shape_cast %75 : vector<1xf32> to vector<1x1x1xf32>
      %77 = vector.extract %76[0, 0, 0] : f32 from vector<1x1x1xf32>
      %c0_36 = arith.constant 0 : index
      %c0_37 = arith.constant 0 : index
      %78 = memref.load %arg4[%c0_36, %c0_37] : memref<1x1xf32, #tpu.memory_space<smem>>
      memref.store %77, %arg4[%c0_36, %c0_37] : memref<1x1xf32, #tpu.memory_space<smem>>
      %c0_38 = arith.constant 0 : index
      %c0_39 = arith.constant 0 : index
      %79 = vector.load %arg7[%c0_38, %c0_39] : memref<5x32xf32, #tpu.memory_space<vmem>>, vector<5x32xf32>
      %80 = vector.shape_cast %79 : vector<5x32xf32> to vector<1x5x32xf32>
      %cst_40 = arith.constant dense<0.000000e+00> : vector<1xf32>
      %81 = vector.multi_reduction <add>, %80, %cst_40 [1, 2] : vector<1x5x32xf32> to vector<1xf32>
      %82 = vector.shape_cast %81 : vector<1xf32> to vector<1x1x1xf32>
      %83 = vector.extract %82[0, 0, 0] : f32 from vector<1x1x1xf32>
      %c0_41 = arith.constant 0 : index
      %c0_42 = arith.constant 0 : index
      %84 = memref.load %arg5[%c0_41, %c0_42] : memref<1x1xf32, #tpu.memory_space<smem>>
      memref.store %83, %arg5[%c0_41, %c0_42] : memref<1x1xf32, #tpu.memory_space<smem>>
    } else {
    }
    return
  }
  func.func @transform_0(%arg0: i32) -> (i32, i32, i32) {
    %c0_i32 = arith.constant 0 : i32
    %c0_i32_0 = arith.constant 0 : i32
    %c0_i32_1 = arith.constant 0 : i32
    return %arg0, %c0_i32, %c0_i32_0 : i32, i32, i32
  }
  func.func @transform_1(%arg0: i32) -> (i32, i32, i32) {
    %c0_i32 = arith.constant 0 : i32
    %c0_i32_0 = arith.constant 0 : i32
    %c0_i32_1 = arith.constant 0 : i32
    return %arg0, %c0_i32, %c0_i32_0 : i32, i32, i32
  }
  func.func @transform_2(%arg0: i32) -> (i32, i32, i32) {
    %c0_i32 = arith.constant 0 : i32
    %c0_i32_0 = arith.constant 0 : i32
    %c0_i32_1 = arith.constant 0 : i32
    return %arg0, %c0_i32, %c0_i32_0 : i32, i32, i32
  }
  func.func @transform_3(%arg0: i32) -> (i32, i32) {
    %c0_i32 = arith.constant 0 : i32
    %c0_i32_0 = arith.constant 0 : i32
    %c0_i32_1 = arith.constant 0 : i32
    return %c0_i32, %c0_i32_0 : i32, i32
  }
  func.func @transform_4(%arg0: i32) -> (i32, i32) {
    %c0_i32 = arith.constant 0 : i32
    %c0_i32_0 = arith.constant 0 : i32
    %c0_i32_1 = arith.constant 0 : i32
    return %c0_i32, %c0_i32_0 : i32, i32
  }
}

</mosaic_0001>

<bundles_post_ra>
// kernel: tpu_custom_call.1
= control target key start
LH: loop header
LB: loop body
LE: loop exit
PB: predicated region body
PF: predicated region fallthrough
CT: control target
= control target key end

     0   :  { %10 = vsyncpa [#allocation5], 0  ;;  %vm22_vm0 = vcmask 258048   ;;  %v259_v2 = vmov 0.0   ;;  %s339_s0 = inlined_call_operand.vmem [shape: f32[2,5,32], index: 0, kind: input, shape index: {}]   ;;  %s340_s1 = inlined_call_operand.vmem [shape: s32[2,1,32], index: 1, kind: input, shape index: {}]   ;;  %s341_s2 = inlined_call_operand.vmem [shape: f32[2,1,32], index: 2, kind: input, shape index: {}]   ;;  %s342_s3 = inlined_call_operand.hbm [shape: f32[1,1], index: 3, kind: output, shape index: {0}]   ;;  %s343_s4 = inlined_call_operand.hbm [shape: f32[1,1], index: 4, kind: output, shape index: {1}]  }
   0x1   :  { %v290_v0 = vld [vmem:[%s339_s0] sm:$0x1f]  ;;  %v295_v1 = vld [vmem:[%s339_s0 + $0x8] sm:$0x1f]  ;;  %23 = vst.msk [vmem:[#allocation2] sm:$0x1f] %vm22_vm0, %v259_v2 }
   0x2   :  { %v49_v3 = vand.u32 2147483647, %v290_v0  ;;  %v50_v4 = vand.u32 2147483647, %v295_v1  ;;  %24 = vst.msk [vmem:[#allocation3] sm:$0x1f] %vm22_vm0, %v259_v2 }
   0x4   :  { %v51_v5 = vsub.f32 0.0, %v49_v3  ;;  %v52_v6 = vsub.f32 0.0, %v50_v4 }
   0x5   :  { %11 = vsyncpa [#allocation7], 0  ;;  %v31_v9 = vlaneseq  ;;  %v215_v11 = vld [vmem:[%s340_s1] ss:$0 sm:$0xff]  ;;  %v216_v12 = vld [vmem:[%s340_s1 + $0x1] ss:$0 sm:$0xff] }
   0x6   :  { %v53_v7 = vmul.f32 1.442695, %v51_v5  ;;  %v55_v8 = vmul.f32 1.442695, %v52_v6  ;;  %v217_v17 = vld [vmem:[%s341_s2] ss:$0 sm:$0xff] }
   0x7   :  { %v32_v10 = vshrl.u32 %v31_v9, 7  ;;  %v218_v19 = vld [vmem:[%s341_s2 + $0x1] ss:$0 sm:$0xff]  ;;  %v75_v23 = vmax.f32 %v290_v0, 0.0  ;;  %v76_v24 = vmax.f32 %v295_v1, 0.0  ;;  %vm81_vm3 = vcmp.ge.f32.partialorder %v290_v0, 0.0 }
   0x8   :  { %219 = vpow2.f32 %v53_v7  ;;  %vm82_vm4 = vcmp.ge.f32.partialorder %v295_v1, 0.0  ;;  %s182_s26 = sshll.u32 %s342_s3, 4  ;;  %s260_s28 = smov [#allocation4]   ;;  %s183_s26 = int_to_ptr.hbm [resolvable:$true] %s182_s26 }
   0x9   :  { %221 = vpow2.f32 %v55_v8  ;;  %vm35_vm1 = vcmp.eq.s32.totalorder %v32_v10, %v215_v11  ;;  %vm36_vm2 = vcmp.eq.s32.totalorder %v32_v10, %v216_v12  ;;  %s191_s5 = sshll.u32 %s343_s4, 4  ;;  %s261_s7 = smov [#allocation6]   ;;  %s192_s5 = int_to_ptr.hbm [resolvable:$true] %s191_s5 }
   0xa   :  { %v206_v21 = vsel %vm35_vm1, 1.0, %v259_v2  ;;  %v207_v22 = vsel %vm36_vm2, 1.0, %v259_v2 }
   0xb   :  { %v87_v25 = vmul.f32 %v206_v21, %v290_v0  ;;  %v88_v26 = vmul.f32 %v207_v22, %v295_v1  ;;  %v47_v27 = vmul.f32 %v217_v17, %v206_v21  ;;  %v48_v29 = vmul.f32 %v218_v19, %v207_v22 }
   0xc   :  { %v103_v35 = vsub.f32 1.0, %v206_v21  ;;  %v104_v36 = vsub.f32 1.0, %v207_v22  ;;  %v117_v37 = vmul.f32 0.2, %v206_v21  ;;  %v118_v41 = vmul.f32 0.2, %v207_v22 }
   0xd   :  { %v89_v39 = vsub.f32 %v75_v23, %v87_v25  ;;  %v90_v40 = vsub.f32 %v76_v24, %v88_v26  ;;  %v93_v42 = vmul.f32 %v47_v27, %v290_v0  ;;  %v94_v47 = vmul.f32 %v48_v29, %v295_v1 }
   0xe   :  { %v220_v13 = vpop.eup %219  ;;  %v119_v52 = vmul.f32 0.8, %v103_v35  ;;  %v120_v53 = vmul.f32 0.8, %v104_v36 }
   0xf   :  { %v222_v14 = vpop.eup %221  ;;  %v57_v15 = vadd.f32 1.0, %v220_v13  ;;  %v60_v18 = vmul.f32 -0.5, %v220_v13  ;;  %v63_v31 = vand.u32 2147483647, %v220_v13  ;;  %v95_v57 = vsub.f32 %v75_v23, %v93_v42 }
  0x10   :  { %v66_v16 = vadd.f32 1.0, %v222_v14  ;;  %v69_v20 = vmul.f32 -0.5, %v222_v14  ;;  %v72_v34 = vand.u32 2147483647, %v222_v14  ;;  %v96_v2 = vsub.f32 %v76_v24, %v94_v47 }
  0x11   :  { %223 = vlog2.f32 %v57_v15  ;;  %v61_v28 = vadd.f32 1.0, %v60_v18  ;;  %vm64_vm5 = vcmp.lt.f32.partialorder %v63_v31, 0.0004427343  ;;  %v121_v5 = vadd.f32 %v119_v52, %v117_v37  ;;  %v142_v31 = vld [vmem:[#allocation3] sm:$0x1f] }
  0x12   :  { %225 = vlog2.f32 %v66_v16  ;;  %v70_v32 = vadd.f32 1.0, %v69_v20  ;;  %vm73_vm6 = vcmp.lt.f32.partialorder %v72_v34, 0.0004427343  ;;  %v122_v8 = vadd.f32 %v120_v53, %v118_v41 }
  0x13   :  { %227 = vrcp.f32 %v57_v15  ;;  %v62_v45 = vmul.f32 %v220_v13, %v61_v28 }
  0x14   :  { %229 = vrcp.f32 %v66_v16  ;;  %v71_v49 = vmul.f32 %v222_v14, %v70_v32 }
  0x17   :  { %v224_v30 = vpop.eup %223 }
  0x18   :  { %v226_v33 = vpop.eup %225  ;;  %v59_v44 = vmul.f32 0.6931472, %v224_v30 }
  0x19   :  { %v228_v38 = vpop.eup %227  ;;  %v68_v48 = vmul.f32 0.6931472, %v226_v33 }
  0x1a   :  { %v230_v43 = vpop.eup %229  ;;  %v83_v46 = vmul.f32 %v228_v38, %v220_v13  ;;  %v65_v58 = vsel %vm64_vm5, %v62_v45, %v59_v44 }
  0x1b   :  { %v84_v50 = vmul.f32 %v230_v43, %v222_v14  ;;  %v74_v62 = vsel %vm73_vm6, %v71_v49, %v68_v48  ;;  %v91_v6 = vadd.f32 %v89_v39, %v65_v58  ;;  %v97_v11 = vadd.f32 %v95_v57, %v65_v58 }
  0x1c   :  { %v85_v51 = vsel %vm81_vm3, %v228_v38, %v83_v46  ;;  %v92_v1 = vadd.f32 %v90_v40, %v74_v62  ;;  %v98_v14 = vadd.f32 %v96_v2, %v74_v62 }
  0x1d   :  { %v86_v54 = vsel %vm82_vm4, %v230_v43, %v84_v50  ;;  %v99_v55 = vmul.f32 %v206_v21, %v85_v51  ;;  %v101_v56 = vsub.f32 1.0, %v85_v51  ;;  %v115_v61 = vmul.f32 %v85_v51, %v85_v51 }
  0x1e   :  { %v100_v59 = vmul.f32 %v207_v22, %v86_v54  ;;  %v102_v60 = vsub.f32 1.0, %v86_v54  ;;  %v116_v3 = vmul.f32 %v86_v54, %v86_v54  ;;  %v123_v19 = vmul.f32 %v121_v5, %v91_v6 }
  0x1f   :  { %v105_v63 = vmul.f32 %v103_v35, %v101_v56  ;;  %v127_v0 = vmul.f32 0.2, %v115_v61  ;;  %v124_v22 = vmul.f32 %v122_v8, %v92_v1 }
  0x20   :  { %v106_v4 = vmul.f32 %v104_v36, %v102_v60  ;;  %v128_v9 = vmul.f32 0.2, %v116_v3 }
  0x21   :  { %v107_v7 = vadd.f32 %v105_v63, %v99_v55  ;;  %v129_v12 = vmul.f32 %v127_v0, %v103_v35 }
  0x22   :  { %v108_v10 = vadd.f32 %v106_v4, %v100_v59  ;;  %v130_v15 = vmul.f32 %v128_v9, %v104_v36 }
  0x23   :  { %v109_v13 = vsub.f32 1.0, %v107_v7  ;;  %v131_v17 = vadd.f32 %v129_v12, %v47_v27  ;;  %v135_v27 = vld [vmem:[#allocation2] sm:$0x1f] }
  0x24   :  { %v110_v16 = vsub.f32 1.0, %v108_v10  ;;  %v132_v20 = vadd.f32 %v130_v15, %v48_v29 }
  0x25   :  { %v111_v18 = vmax.f32 %v109_v13, 0.0  ;;  %v133_v23 = vmul.f32 %v131_v17, %v97_v11 }
  0x26   :  { %v112_v21 = vmax.f32 %v110_v16, 0.0  ;;  %v134_v25 = vmul.f32 %v132_v20, %v98_v14 }
  0x27   :  { %v113_v24 = vmul.f32 %v111_v18, %v111_v18  ;;  %v143_v28 = vsel %vm22_vm0, %v133_v23, 0.0 }
  0x28   :  { %v114_v26 = vmul.f32 %v112_v21, %v112_v21  ;;  %v144_v32 = vsel %vm22_vm0, %v134_v25, 0.0 }
  0x29   :  { %v125_v30 = vmul.f32 %v123_v19, %v113_v24  ;;  %v145_v34 = vadd.f32 %v144_v32, %v143_v28 }
  0x2a   :  { %v126_v33 = vmul.f32 %v124_v22, %v114_v26 }
  0x2b   :  { %v137_v35 = vsel %vm22_vm0, %v125_v30, 0.0  ;;  %v146_v29 = vadd.f32 %v145_v34, %v142_v31 }
  0x2c   :  { %v138_v36 = vsel %vm22_vm0, %v126_v33, 0.0 }
  0x2d   :  { %v139_v37 = vadd.f32 %v138_v36, %v137_v35  ;;  %147 = vst.msk [vmem:[#allocation3] sm:$0x1f] %vm22_vm0, %v146_v29 }
  0x2f   :  { %v140_v38 = vadd.f32 %v139_v37, %v135_v27 }
  0x31   :  { %141 = vst.msk [vmem:[#allocation2] sm:$0x1f] %vm22_vm0, %v140_v38 }
  0x34   :  { %v164_v41 = vld [vmem:[#allocation3] sm:$0x1f] }
  0x35   :  { %v165_v42 = vsel %vm22_vm0, %v164_v41, 0.0 }
  0x38   :  { %v151_v39 = vld [vmem:[#allocation2] sm:$0x1f] }
  0x39   :  { %v152_v40 = vsel %vm22_vm0, %v151_v39, 0.0 }
  0x3a   :  { %153 = vadd.xlane.f32.xlu0 %v152_v40 }
  0x42   :  { %166 = vadd.xlane.f32.xlu0 %v165_v42 }
  0xad   :  { %v154_v43 = vpop.xlane.xlu0 %153 }
  0xae   :  { %v155_v44 = vrot.slane %v154_v43, 4 }
  0xb0   :  { %v156_v45 = vadd.f32 %v155_v44, %v154_v43 }
  0xb2   :  { %v157_v46 = vrot.slane %v156_v45, 2 }
  0xb4   :  { %v158_v47 = vadd.f32 %v157_v46, %v156_v45 }
  0xb5   :  { %v167_v48 = vpop.xlane.xlu0 %166 }
  0xb6   :  { %v168_v49 = vrot.slane %v167_v48, 4  ;;  %v159_v50 = vrot.slane %v158_v47, 1 }
  0xb8   :  { %v169_v51 = vadd.f32 %v168_v49, %v167_v48  ;;  %v160_v52 = vadd.f32 %v159_v50, %v158_v47 }
  0xba   :  { %v170_v53 = vrot.slane %v169_v51, 2  ;;  %208 = vpush %v160_v52 }
  0xbc   :  { %v171_v54 = vadd.f32 %v170_v53, %v169_v51 }
  0xbe   :  { %v172_v55 = vrot.slane %v171_v54, 1 }
  0xc0   :  { %v173_v56 = vadd.f32 %v172_v55, %v171_v54 }
  0xc2   :  { %210 = vpush %v173_v56 }
  0xeb   :  { %s209_s27 = spop %208 }
  0xec   :  { %163 = sst [smem:[#allocation4]] %s209_s27 }
  0xed   :  { %185 = dma.smem_to_hbm %s260_s28, 16, %s183_s26, [#allocation5]  }
  0xf3   :  { %s211_s6 = spop %210 }
  0xf4   :  { %176 = sst [smem:[#allocation6]] %s211_s6 }
  0xf5   :  { %194 = dma.smem_to_hbm %s261_s7, 16, %s192_s5, [#allocation7]  }
  0xf6   :  { %255 = dma.done.wait [#allocation5], 16  }
  0xf7   :  { %256 = vsyncadd [#allocation5], 4294967280 }
  0xf8   :  { %257 = dma.done.wait [#allocation7], 16  }
  0xf9   :  { %258 = vsyncadd [#allocation7], 4294967280 }
  0xfa   :  { %203 = sfence }
  0xfb   :  { %204 = vsyncpa [#allocation5], 1 }
  0xfc   :  { %205 = vsyncpa [#allocation7], 1 }

</bundles_post_ra>
